<compile_context>
chip_gen: v7x
topology: tpu7x:2x2x1
jax: 0.10.0
libtpu: 0.0.40
codegen_flags: <defaults>
</compile_context>

<pallas_src>
import functools

import jax
import jax.numpy as jnp
from jax.experimental import pallas as pl
from jax.experimental.pallas import tpu as pltpu


def _round_up(x, m):
    return -(-x // m) * m


def _residual_block_kernel(x_ref, wfg_ref, bfg_ref, wrs_ref, brs_ref,
                           skip_ref, res_ref, carry_ref, *,
                           K, dilation, Cr, Cd, halo):
    """One (batch element, time tile) per grid step.  Time stays on lanes.

    x_ref    : (Cr, Tt)        current time tile of x (stream dtype)
    wfg_ref  : (K, 2*Cd, Cr)   fused filter|gate weights; slot j pairs with delay j*dilation
    bfg_ref  : (2*Cd, 1)       fused filter|gate biases (f32)
    wrs_ref  : (Cr+Cs, Cd)     fused residual|skip 1x1 weights
    brs_ref  : (Cr+Cs, 1)      fused 1x1 biases (f32)
    skip_ref : (Cs, Tt)
    res_ref  : (Cr, Tt)
    carry_ref: (Cr, max(halo,1)) VMEM scratch: last `halo` columns of the previous tile
    """
    t = pl.program_id(1)
    Tt = x_ref.shape[-1]

    if halo > 0:
        # Causal left padding: zero the carry at the first time tile of each batch.
        @pl.when(t == 0)
        def _():
            carry_ref[...] = jnp.zeros_like(carry_ref)

    x_b = x_ref[...]                                               # (Cr, Tt)

    if halo > 0:
        # Previous-tile tail glued in front of the current tile (tiny lane concat).
        halo_cat = jnp.concatenate([carry_ref[...], x_b], axis=-1)  # (Cr, halo+Tt)

    # Fused causal dilated conv (filter|gate): sum of K lane-dense matmuls, f32 acc.
    pre = None
    for j in range(K):
        if j == 0:
            tap = x_b
        else:
            off = halo - j * dilation                               # static
            tap = halo_cat[:, off:off + Tt]
        contrib = jnp.dot(wfg_ref[j], tap, preferred_element_type=jnp.float32)
        pre = contrib if pre is None else pre + contrib
    pre = pre + bfg_ref[...]                                        # (2Cd, Tt) f32

    # Gated activation in f32 (VPU/EUP).
    z = jnp.tanh(pre[:Cd, :]) * jax.nn.sigmoid(pre[Cd:, :])         # (Cd, Tt) f32

    # Fused residual + skip 1x1 convs: a single matmul.
    out = jnp.dot(wrs_ref[...], z.astype(wrs_ref.dtype),
                  preferred_element_type=jnp.float32) + brs_ref[...]  # (Cr+Cs, Tt)

    res_ref[...] = (x_b.astype(jnp.float32) + out[:Cr, :]).astype(res_ref.dtype)
    skip_ref[...] = out[Cr:, :].astype(skip_ref.dtype)

    if halo > 0:
        # Save this tile's tail for the next tile (after all uses of the carry).
        carry_ref[...] = x_b[:, Tt - halo:]


@functools.partial(jax.jit, static_argnames=("kernel_size", "dilation",
                                              "time_tile", "use_bf16_streams"))
def residual_block(x, params, *, kernel_size, dilation,
                   time_tile=8192, use_bf16_streams=False):
    """x: (B, Cr, T) float32 NCW, like the PyTorch module.

    params in PyTorch layout: conv weights (out, in, tap), biases (out,).
    Returns (skip, residual) in NCW.
    """
    wf, bf, wg, bg, wr, br, ws, bs = params
    B, Cr, T = x.shape
    K, d = kernel_size, dilation
    Cd = wf.shape[0]
    Cs = ws.shape[0]
    halo = (K - 1) * d

    # ---- weight / bias fusion (tiny, plain XLA) ----
    # Delay slot j (delay of j*d samples) pairs with PyTorch tap index K-1-j.
    w_fg = jnp.stack(
        [jnp.concatenate([wf[:, :, K - 1 - j], wg[:, :, K - 1 - j]], axis=0)
         for j in range(K)], axis=0)                                 # (K, 2Cd, Cr)
    b_fg = jnp.concatenate([bf, bg], axis=0)[:, None].astype(jnp.float32)   # (2Cd, 1)
    w_rs = jnp.concatenate([wr[:, :, 0], ws[:, :, 0]], axis=0)       # (Cr+Cs, Cd)
    b_rs = jnp.concatenate([br, bs], axis=0)[:, None].astype(jnp.float32)   # (Cr+Cs, 1)

    # ---- time tiling: lane-dense tiles, tile covers the causal halo ----
    assert time_tile % 128 == 0, "time_tile must be a multiple of 128"
    Tt = min(time_tile, _round_up(T, 128))
    Tt = max(Tt, _round_up(max(halo, 1), 128))   # carry only reaches one tile back
    Tp = _round_up(T, Tt)
    n_tiles = Tp // Tt

    stream_dtype = jnp.bfloat16 if use_bf16_streams else jnp.float32
    out_dtype = jnp.bfloat16 if use_bf16_streams else jnp.float32

    x_pad = x if Tp == T else jnp.pad(x, ((0, 0), (0, 0), (0, Tp - T)))
    x_pad = x_pad.astype(stream_dtype)
    w_fg = w_fg.astype(stream_dtype)
    w_rs = w_rs.astype(stream_dtype)

    kernel = functools.partial(_residual_block_kernel,
                               K=K, dilation=d, Cr=Cr, Cd=Cd, halo=halo)

    in_bytes = jnp.dtype(stream_dtype).itemsize
    out_bytes = jnp.dtype(out_dtype).itemsize
    cost = pl.CostEstimate(
        flops=2 * B * T * (2 * Cd * K * Cr + (Cr + Cs) * Cd),
        transcendentals=2 * B * T * Cd,
        bytes_accessed=int(B * Tp * (Cr * in_bytes + (Cr + Cs) * out_bytes)
                           + (w_fg.size + w_rs.size) * in_bytes
                           + (b_fg.size + b_rs.size) * 4))

    skip, res = pl.pallas_call(
        kernel,
        out_shape=(jax.ShapeDtypeStruct((B, Cs, Tp), out_dtype),
                   jax.ShapeDtypeStruct((B, Cr, Tp), out_dtype)),
        grid_spec=pltpu.PrefetchScalarGridSpec(
            num_scalar_prefetch=0,
            grid=(B, n_tiles),
            in_specs=[
                pl.BlockSpec((None, Cr, Tt), lambda b, t: (b, 0, t)),   # x tile
                pl.BlockSpec((K, 2 * Cd, Cr), lambda b, t: (0, 0, 0)),  # fused conv W
                pl.BlockSpec((2 * Cd, 1), lambda b, t: (0, 0)),         # fused conv b
                pl.BlockSpec((Cr + Cs, Cd), lambda b, t: (0, 0)),       # fused 1x1 W
                pl.BlockSpec((Cr + Cs, 1), lambda b, t: (0, 0)),        # fused 1x1 b
            ],
            out_specs=[
                pl.BlockSpec((None, Cs, Tt), lambda b, t: (b, 0, t)),
                pl.BlockSpec((None, Cr, Tt), lambda b, t: (b, 0, t)),
            ],
            scratch_shapes=[pltpu.VMEM((Cr, max(halo, 1)), stream_dtype)],
        ),
        compiler_params=pltpu.CompilerParams(
            dimension_semantics=("parallel", "arbitrary")),
        cost_estimate=cost,
    )(x_pad, w_fg, b_fg, w_rs, b_rs)

    if Tp != T:
        skip, res = skip[:, :, :T], res[:, :, :T]
    return skip, res


def _reference(x, params, *, kernel_size, dilation):
    """Pure-JAX reference of the PyTorch forward (independent code path, NCW)."""
    wf, bf, wg, bg, wr, br, ws, bs = params
    K, d = kernel_size, dilation
    B, Cr, T = x.shape

    def causal_conv(x, w, b):
        pad = (K - 1) * d
        xp = jnp.pad(x, ((0, 0), (0, 0), (pad, 0)))
        y = sum(jnp.einsum("oc,bct->bot", w[:, :, k], xp[:, :, k * d:k * d + T])
                for k in range(K))
        return y + b[None, :, None]

    x_f = causal_conv(x, wf, bf)
    x_g = causal_conv(x, wg, bg)
    z = jnp.tanh(x_f) * jax.nn.sigmoid(x_g)
    skip = jnp.einsum("oc,bct->bot", ws[:, :, 0], z) + bs[None, :, None]
    res = x + jnp.einsum("oc,bct->bot", wr[:, :, 0], z) + br[None, :, None]
    return skip, res


if __name__ == "__main__":
    # Module hyperparameters (small, consistent with the PyTorch module).
    residual_channels = 8
    dilation_channels = 16
    skip_channels = 16
    kernel_size = 2
    dilation = 2
    B, T = 2, 16

    key = jax.random.PRNGKey(0)
    ks = jax.random.split(key, 10)
    scale = 0.1
    # PyTorch-layout parameters: conv weight (out, in, tap), bias (out,).
    wf = scale * jax.random.normal(ks[0], (dilation_channels, residual_channels, kernel_size), jnp.float32)
    bf = scale * jax.random.normal(ks[1], (dilation_channels,), jnp.float32)
    wg = scale * jax.random.normal(ks[2], (dilation_channels, residual_channels, kernel_size), jnp.float32)
    bg = scale * jax.random.normal(ks[3], (dilation_channels,), jnp.float32)
    wr = scale * jax.random.normal(ks[4], (residual_channels, dilation_channels, 1), jnp.float32)
    br = scale * jax.random.normal(ks[5], (residual_channels,), jnp.float32)
    ws = scale * jax.random.normal(ks[6], (skip_channels, dilation_channels, 1), jnp.float32)
    bs = scale * jax.random.normal(ks[7], (skip_channels,), jnp.float32)
    params = (wf, bf, wg, bg, wr, br, ws, bs)

    x = jax.random.normal(ks[8], (B, residual_channels, T), jnp.float32)   # NCW, like PyTorch

    # --- f32 path, single tile (T padded up to a lane-dense 128) ---
    skip_ref, res_ref = _reference(x, params, kernel_size=kernel_size, dilation=dilation)
    skip, residual = residual_block(x, params, kernel_size=kernel_size, dilation=dilation)
    jax.block_until_ready((skip, residual))
    assert skip.shape == (B, skip_channels, T)
    assert residual.shape == (B, residual_channels, T)
    assert jnp.allclose(skip, skip_ref, atol=1e-4, rtol=1e-4)
    assert jnp.allclose(residual, res_ref, atol=1e-4, rtol=1e-4)

    # --- f32 path, multi-tile with a cross-tile halo carry (T=700, dilation=64, Tt=256) ---
    T2, d2 = 700, 64
    x2 = jax.random.normal(ks[9], (B, residual_channels, T2), jnp.float32)
    skip2_ref, res2_ref = _reference(x2, params, kernel_size=kernel_size, dilation=d2)
    skip2, res2 = residual_block(x2, params, kernel_size=kernel_size, dilation=d2,
                                 time_tile=256)
    jax.block_until_ready((skip2, res2))
    assert jnp.allclose(skip2, skip2_ref, atol=1e-4, rtol=1e-4)
    assert jnp.allclose(res2, res2_ref, atol=1e-4, rtol=1e-4)

    # --- bf16 streaming path (v6e/v7x bandwidth option; f32 gating/accumulation) ---
    skip_bf, res_bf = residual_block(x, params, kernel_size=kernel_size,
                                     dilation=dilation, use_bf16_streams=True)
    jax.block_until_ready((skip_bf, res_bf))
    assert jnp.allclose(skip_bf.astype(jnp.float32), skip_ref, atol=5e-2, rtol=5e-2)
    assert jnp.allclose(res_bf.astype(jnp.float32), res_ref, atol=5e-2, rtol=5e-2)

    print("KERNEL_OK")
</pallas_src>

<mosaic_0001>
module attributes {stable_mosaic.version = 11 : i64} {
  func.func @_residual_block_kernel(%arg0: i32, %arg1: i32, %arg2: memref<1x8x128xf32, #tpu.memory_space<vmem>>, %arg3: memref<2x32x8xf32, #tpu.memory_space<vmem>>, %arg4: memref<32x1xf32, #tpu.memory_space<vmem>>, %arg5: memref<24x16xf32, #tpu.memory_space<vmem>>, %arg6: memref<24x1xf32, #tpu.memory_space<vmem>>, %arg7: memref<1x16x128xf32, #tpu.memory_space<vmem>>, %arg8: memref<1x8x128xf32, #tpu.memory_space<vmem>>, %arg9: memref<8x2xf32, #tpu.memory_space<vmem>>) attributes {dimension_semantics = [#tpu.dimension_semantics<parallel>, #tpu.dimension_semantics<arbitrary>], iteration_bounds = array<i64: 2, 1>, scalar_prefetch = 0 : i64, scratch_operands = 1 : i64, tpu.core_type = #tpu.core_type<tc>, window_params = [{transform_indices = @transform_0, window_bounds = array<i64: 1, 8, 128>}, {pipeline_mode = #tpu.pipeline_mode<synchronous>, transform_indices = @transform_1, window_bounds = array<i64: 2, 32, 8>}, {pipeline_mode = #tpu.pipeline_mode<synchronous>, transform_indices = @transform_2, window_bounds = array<i64: 32, 1>}, {pipeline_mode = #tpu.pipeline_mode<synchronous>, transform_indices = @transform_3, window_bounds = array<i64: 24, 16>}, {pipeline_mode = #tpu.pipeline_mode<synchronous>, transform_indices = @transform_4, window_bounds = array<i64: 24, 1>}, {transform_indices = @transform_5, window_bounds = array<i64: 1, 16, 128>}, {transform_indices = @transform_6, window_bounds = array<i64: 1, 8, 128>}]} {
    %c0_i32 = arith.constant 0 : i32
    %0 = arith.cmpi eq, %arg1, %c0_i32 : i32
    %1 = arith.extui %0 : i1 to i32
    %c0_i32_0 = arith.constant 0 : i32
    %2 = arith.cmpi ne, %1, %c0_i32_0 : i32
    scf.if %2 {
      %cst_27 = arith.constant 0.000000e+00 : f32
      %43 = vector.broadcast %cst_27 : f32 to vector<8x2xf32>
      %c0_28 = arith.constant 0 : index
      %c0_29 = arith.constant 0 : index
      %44 = vector.load %arg9[%c0_28, %c0_29] : memref<8x2xf32, #tpu.memory_space<vmem>>, vector<8x2xf32>
      tpu.vector_store %arg9[%c0_28, %c0_29], %43 {strides = array<i32>} : memref<8x2xf32, #tpu.memory_space<vmem>>, vector<8x2xf32>,
    } else {
    }
    %c0 = arith.constant 0 : index
    %c0_1 = arith.constant 0 : index
    %c0_2 = arith.constant 0 : index
    %3 = vector.load %arg2[%c0, %c0_1, %c0_2] : memref<1x8x128xf32, #tpu.memory_space<vmem>>, vector<1x8x128xf32>
    %4 = vector.shape_cast %3 : vector<1x8x128xf32> to vector<8x128xf32>
    %c0_3 = arith.constant 0 : index
    %c0_4 = arith.constant 0 : index
    %5 = vector.load %arg9[%c0_3, %c0_4] : memref<8x2xf32, #tpu.memory_space<vmem>>, vector<8x2xf32>
    %6 = tpu.concatenate %5, %4 in 1 : vector<8x2xf32>, vector<8x128xf32> -> vector<8x130xf32>
    %c0_5 = arith.constant 0 : index
    %c0_6 = arith.constant 0 : index
    %c0_7 = arith.constant 0 : index
    %7 = vector.load %arg3[%c0_5, %c0_6, %c0_7] : memref<2x32x8xf32, #tpu.memory_space<vmem>>, vector<1x32x8xf32>
    %8 = vector.shape_cast %7 : vector<1x32x8xf32> to vector<32x8xf32>
    %cst = arith.constant dense<0.000000e+00> : vector<32x128xf32>
    %9 = tpu.matmul %8, %4, %cst {dimension_numbers = #tpu.dot_dimension_numbers<[1], [0], [0], [1], [0, 0, 1, 1], [], []>} : vector<32x8xf32>, vector<8x128xf32>, vector<32x128xf32> -> vector<32x128xf32>
    %10 = vector.extract_strided_slice %6 {offsets = [0, 0], sizes = [8, 128], strides = [1, 1]} : vector<8x130xf32> to vector<8x128xf32>
    %c1 = arith.constant 1 : index
    %c0_8 = arith.constant 0 : index
    %c0_9 = arith.constant 0 : index
    %11 = vector.load %arg3[%c1, %c0_8, %c0_9] : memref<2x32x8xf32, #tpu.memory_space<vmem>>, vector<1x32x8xf32>
    %12 = vector.shape_cast %11 : vector<1x32x8xf32> to vector<32x8xf32>
    %cst_10 = arith.constant dense<0.000000e+00> : vector<32x128xf32>
    %13 = tpu.matmul %12, %10, %cst_10 {dimension_numbers = #tpu.dot_dimension_numbers<[1], [0], [0], [1], [0, 0, 1, 1], [], []>} : vector<32x8xf32>, vector<8x128xf32>, vector<32x128xf32> -> vector<32x128xf32>
    %14 = arith.addf %9, %13 : vector<32x128xf32>
    %c0_11 = arith.constant 0 : index
    %c0_12 = arith.constant 0 : index
    %15 = vector.load %arg4[%c0_11, %c0_12] : memref<32x1xf32, #tpu.memory_space<vmem>>, vector<32x1xf32>
    %16 = vector.broadcast %15 : vector<32x1xf32> to vector<32x128xf32>
    %17 = arith.addf %14, %16 : vector<32x128xf32>
    %18 = vector.extract_strided_slice %17 {offsets = [0, 0], sizes = [16, 128], strides = [1, 1]} : vector<32x128xf32> to vector<16x128xf32>
    %19 = math.tanh %18 : vector<16x128xf32>
    %20 = vector.extract_strided_slice %17 {offsets = [16, 0], sizes = [16, 128], strides = [1, 1]} : vector<32x128xf32> to vector<16x128xf32>
    %21 = arith.negf %20 : vector<16x128xf32>
    %22 = math.exp %21 : vector<16x128xf32>
    %cst_13 = arith.constant 1.000000e+00 : f32
    %23 = vector.broadcast %cst_13 : f32 to vector<16x128xf32>
    %24 = arith.addf %23, %22 : vector<16x128xf32>
    %25 = arith.divf %23, %24 : vector<16x128xf32>
    %26 = arith.mulf %19, %25 : vector<16x128xf32>
    %c0_14 = arith.constant 0 : index
    %c0_15 = arith.constant 0 : index
    %27 = vector.load %arg5[%c0_14, %c0_15] : memref<24x16xf32, #tpu.memory_space<vmem>>, vector<24x16xf32>
    %cst_16 = arith.constant dense<0.000000e+00> : vector<24x128xf32>
    %28 = tpu.matmul %27, %26, %cst_16 {dimension_numbers = #tpu.dot_dimension_numbers<[1], [0], [0], [1], [0, 0, 1, 1], [], []>} : vector<24x16xf32>, vector<16x128xf32>, vector<24x128xf32> -> vector<24x128xf32>
    %c0_17 = arith.constant 0 : index
    %c0_18 = arith.constant 0 : index
    %29 = vector.load %arg6[%c0_17, %c0_18] : memref<24x1xf32, #tpu.memory_space<vmem>>, vector<24x1xf32>
    %30 = vector.broadcast %29 : vector<24x1xf32> to vector<24x128xf32>
    %31 = arith.addf %28, %30 : vector<24x128xf32>
    %32 = vector.extract_strided_slice %31 {offsets = [0, 0], sizes = [8, 128], strides = [1, 1]} : vector<24x128xf32> to vector<8x128xf32>
    %33 = arith.addf %4, %32 : vector<8x128xf32>
    %c0_19 = arith.constant 0 : index
    %c0_20 = arith.constant 0 : index
    %c0_21 = arith.constant 0 : index
    %34 = vector.load %arg8[%c0_19, %c0_20, %c0_21] : memref<1x8x128xf32, #tpu.memory_space<vmem>>, vector<1x8x128xf32>
    %35 = vector.shape_cast %34 : vector<1x8x128xf32> to vector<8x128xf32>
    %36 = vector.shape_cast %33 : vector<8x128xf32> to vector<1x8x128xf32>
    tpu.vector_store %arg8[%c0_19, %c0_20, %c0_21], %36 {strides = array<i32>} : memref<1x8x128xf32, #tpu.memory_space<vmem>>, vector<1x8x128xf32>,
    %37 = vector.extract_strided_slice %31 {offsets = [8, 0], sizes = [16, 128], strides = [1, 1]} : vector<24x128xf32> to vector<16x128xf32>
    %c0_22 = arith.constant 0 : index
    %c0_23 = arith.constant 0 : index
    %c0_24 = arith.constant 0 : index
    %38 = vector.load %arg7[%c0_22, %c0_23, %c0_24] : memref<1x16x128xf32, #tpu.memory_space<vmem>>, vector<1x16x128xf32>
    %39 = vector.shape_cast %38 : vector<1x16x128xf32> to vector<16x128xf32>
    %40 = vector.shape_cast %37 : vector<16x128xf32> to vector<1x16x128xf32>
    tpu.vector_store %arg7[%c0_22, %c0_23, %c0_24], %40 {strides = array<i32>} : memref<1x16x128xf32, #tpu.memory_space<vmem>>, vector<1x16x128xf32>,
    %41 = vector.extract_strided_slice %4 {offsets = [0, 126], sizes = [8, 2], strides = [1, 1]} : vector<8x128xf32> to vector<8x2xf32>
    %c0_25 = arith.constant 0 : index
    %c0_26 = arith.constant 0 : index
    %42 = vector.load %arg9[%c0_25, %c0_26] : memref<8x2xf32, #tpu.memory_space<vmem>>, vector<8x2xf32>
    tpu.vector_store %arg9[%c0_25, %c0_26], %41 {strides = array<i32>} : memref<8x2xf32, #tpu.memory_space<vmem>>, vector<8x2xf32>,
    return
  }
  func.func @transform_0(%arg0: i32, %arg1: i32) -> (i32, i32, i32) {
    %c0_i32 = arith.constant 0 : i32
    %c0_i32_0 = arith.constant 0 : i32
    return %arg0, %c0_i32, %arg1 : i32, i32, i32
  }
  func.func @transform_1(%arg0: i32, %arg1: i32) -> (i32, i32, i32) {
    %c0_i32 = arith.constant 0 : i32
    %c0_i32_0 = arith.constant 0 : i32
    %c0_i32_1 = arith.constant 0 : i32
    %c0_i32_2 = arith.constant 0 : i32
    return %c0_i32, %c0_i32_0, %c0_i32_1 : i32, i32, i32
  }
  func.func @transform_2(%arg0: i32, %arg1: i32) -> (i32, i32) {
    %c0_i32 = arith.constant 0 : i32
    %c0_i32_0 = arith.constant 0 : i32
    %c0_i32_1 = arith.constant 0 : i32
    return %c0_i32, %c0_i32_0 : i32, i32
  }
  func.func @transform_3(%arg0: i32, %arg1: i32) -> (i32, i32) {
    %c0_i32 = arith.constant 0 : i32
    %c0_i32_0 = arith.constant 0 : i32
    %c0_i32_1 = arith.constant 0 : i32
    return %c0_i32, %c0_i32_0 : i32, i32
  }
  func.func @transform_4(%arg0: i32, %arg1: i32) -> (i32, i32) {
    %c0_i32 = arith.constant 0 : i32
    %c0_i32_0 = arith.constant 0 : i32
    %c0_i32_1 = arith.constant 0 : i32
    return %c0_i32, %c0_i32_0 : i32, i32
  }
  func.func @transform_5(%arg0: i32, %arg1: i32) -> (i32, i32, i32) {
    %c0_i32 = arith.constant 0 : i32
    %c0_i32_0 = arith.constant 0 : i32
    return %arg0, %c0_i32, %arg1 : i32, i32, i32
  }
  func.func @transform_6(%arg0: i32, %arg1: i32) -> (i32, i32, i32) {
    %c0_i32 = arith.constant 0 : i32
    %c0_i32_0 = arith.constant 0 : i32
    return %arg0, %c0_i32, %arg1 : i32, i32, i32
  }
}

</mosaic_0001>

<bundles_post_ra>
// kernel: residual_block.1
= control target key start
LH: loop header
LB: loop body
LE: loop exit
PB: predicated region body
PF: predicated region fallthrough
CT: control target
= control target key end

     0   :  { %12 = vsyncpa [#allocation4], 0  ;;  %s1362_s0 = inlined_call_operand.vmem [shape: f32[2,8,128], index: 0, kind: input, shape index: {}]   ;;  %s1363_s1 = inlined_call_operand.vmem [shape: f32[2,32,8], index: 1, kind: input, shape index: {}]   ;;  %s1364_s2 = inlined_call_operand.vmem [shape: f32[32,1], index: 2, kind: input, shape index: {}]   ;;  %s1365_s3 = inlined_call_operand.vmem [shape: f32[24,16], index: 3, kind: input, shape index: {}]   ;;  %s1366_s4 = inlined_call_operand.vmem [shape: f32[24,1], index: 4, kind: input, shape index: {}]   ;;  %s1367_s5 = inlined_call_operand.hbm [shape: f32[2,16,128], index: 5, kind: output, shape index: {0}]   ;;  %s1368_s6 = inlined_call_operand.hbm [shape: f32[2,8,128], index: 6, kind: output, shape index: {1}]  }
   0x1   :  { %14 = vsyncpa [#allocation4 + $0x1], 0 }
   0x2   :  { %15 = vsyncpa [#allocation6], 0 }
   0x3   :  { %17 = vsyncpa [#allocation6 + $0x1], 0  ;;  %s1126_s21 = smov 0   ;;  %s1128_s22 = smov 0  }
   0x4   :  { %s1130_s23 = smov 0   ;;  %s1132_s24 = smov 0  }
   0x5   :  { %s1134_s25 = smov 0   ;;  %s1136_s26 = smov 0  }
   0x6 LB: > { %s805_s27 = sadd.s32 4294967295, %s1080_s26   ;;  %s806_s28 = sadd.s32 4294967294, %s1080_s26   ;;  %s1080_s26 = sphi %s1136_s26, %s23_s26   ;;  %s1076_s25 = sphi %s1134_s25, %s1376_s25   ;;  %s1072_s24 = sphi %s1132_s24, %s1375_s24   ;;  %s1068_s23 = sphi %s1130_s23, %s1374_s23   ;;  %s1064_s22 = sphi %s1128_s22, %s1373_s22   ;;  %s1060_s21 = sphi %s1126_s21, %s1372_s21  }
   0x7   : > { %s35_s29 = sadd.s32 1, %s1076_s25  ;;  %s156_s30 = sadd.s32 1, %s1068_s23 }
   0x8   : > { %p37_p0 = scmp.ge.s32.totalorder %s35_s29, 2  ;;  %p166_p1 = scmp.ne.s32.totalorder %s1068_s23, %s1064_s22 }
   0x9   : > { %p167_p2 = scmp.eq.s32.totalorder %s805_s27, 1  ;;  %p172_p3 = scmp.ne.s32.totalorder %s1064_s22, %s1060_s21 }
   0xa   : > { %s1378_s29 = smov (%p37_p0, %s35_s29), 0  ;;  %p173_p5 = scmp.eq.s32.totalorder %s806_s28, 1 }
   0xb   : > { %p1166_p4 = por %p167_p2, %p166_p1  ;;  %s151_s8 = ssub.s32 %s1076_s25, %s1378_s29 }
   0xc   : > { %p809_p6 = scmp.ge.s32.totalorder %s1080_s26, 1  ;;  %p154_p7 = scmp.eq.s32.totalorder %s151_s8, 0 }
   0xd   : > { %p1173_p8 = por %p173_p5, %p172_p3  ;;  %p241_p9 = scmp.lt.s32.totalorder %s1080_s26, 3 }
   0xe   : > { %s1179_s10 = scalar_select %p154_p7, %s1068_s23, %s156_s30  }
   0xf   : > { %p242_p10 = pnand %p809_p6, %p241_p9 }
  0x10   : > { %p278_p11 = scmp.lt.s32.totalorder (!%p242_p10), %s1072_s24, 1  ;;  %vm289_vm0 = vcmask (!%p242_p10), 15360   ;;  %v813_v0 = vld [vmem:[%s1363_s1 + $0x20] sm:$0xff] (!%p242_p10)  ;;  %vm308_vm1 = vcmask (!%p242_p10), 64512   ;;  %v1082_v1 = vmov (!%p242_p10), 0.0   ;;  %s1083_s18 = smov (!%p242_p10), 2  }
  0x11   : > { %245 = sbr.rel (%p242_p10) target bundleno = 662 (0x296), region = 40  ;;  %290 = vst.msk [vmem:[#allocation2] sm:$0xff] (!%p242_p10), %vm289_vm0, %v1082_v1  ;;  %855 = vmatprep.mubr.msk.f32.mxu0 (!%p242_p10), %vm308_vm1, %v813_v0  ;;  %v506_v3 = vld [vmem:[%s1364_s2 + $0x18] sm:$0xff] (!%p242_p10)  ;;  %v505_v4 = vld [vmem:[%s1364_s2 + $0x10] sm:$0xff] (!%p242_p10)  ;;  %v1084_v5 = vmov (!%p242_p10), 0   ;;  %v503_v6 = vld [vmem:[%s1364_s2] sm:$0xff] (!%p242_p10) }
  0x12   : > { %957 = vset.pattern.permute.xlu1 (!%p242_p10), %v1084_v5  ;;  %956 = vset.pattern.permute.xlu0 (!%p242_p10), %v1084_v5  ;;  %v550_v7 = vld [vmem:[%s1366_s4] sm:$0xff] (!%p242_p10)  ;;  %v504_v8 = vld [vmem:[%s1364_s2 + $0x8] sm:$0xff] (!%p242_p10)  ;;  %v552_v9 = vld [vmem:[%s1366_s4 + $0x10] sm:$0xff] (!%p242_p10)  ;;  %v1085_v21 = vmov (!%p242_p10), 0.0|0.0   ;;  %vm1086_vm2 = vmmov (!%p242_p10), 0   ;;  %vm568_vm3 = vcmask (!%p242_p10), 130048  }
  0x13   : > { %524 = vperm.xlu1 (!%p242_p10), %957, %v506_v3   ;;  %v551_v10 = vld [vmem:[%s1366_s4 + $0x8] sm:$0xff] (!%p242_p10)  ;;  %v815_v15 = vld [vmem:[%s1363_s1 + $0x30] sm:$0xff] (!%p242_p10)  ;;  %v816_v16 = vld [vmem:[%s1363_s1 + $0x38] sm:$0xff] (!%p242_p10)  ;;  %882 = vmatprep.subr.bf16.mxu1 (!%p242_p10), %v1085_v21  ;;  %s1264_s11 = sand.u32 (!%p242_p10), 1, %s1064_s22  }
  0x14   : > { %v814_v14 = vld [vmem:[%s1363_s1 + $0x28] sm:$0xff] (!%p242_p10)  ;;  %v299_v17 = vld [vmem:[%s1363_s1] sm:$0xff] (!%p242_p10)  ;;  %v301_v19 = vld [vmem:[%s1363_s1 + $0x10] sm:$0xff] (!%p242_p10)  ;;  %873 = vmatprep.mubr.msk.f32.mxu1 (!%p242_p10), %vm1086_vm2, %v1082_v1  ;;  %s811_s12 = sshll.u32 (!%p242_p10), %s1264_s11, 3  ;;  %s669_s30 = scalar_lea.sflag (!%p242_p10), [#allocation6], %s1264_s11 }
  0x15   : > { %v300_v18 = vld [vmem:[%s1363_s1 + $0x8] sm:$0xff] (!%p242_p10)  ;;  %v302_v20 = vld [vmem:[%s1363_s1 + $0x18] sm:$0xff] (!%p242_p10)  ;;  %v547_v47 = vld [vmem:[%s1365_s3] sm:$0xff] (!%p242_p10)  ;;  %s277_s15 = scalar_lea.vmem (!%p242_p10), [#allocation5], %s811_s12  ;;  %s1087_s12 = smov (!%p242_p10), [#allocation5]  }
  0x16   : > { %v548_v48 = vld [vmem:[%s1365_s3 + $0x8] sm:$0xff] (!%p242_p10)  ;;  %v549_v49 = vld [vmem:[%s1365_s3 + $0x10] sm:$0xff] (!%p242_p10)  ;;  %s700_s16 = sshll.u32 (!%p242_p10), %s277_s15, 4  ;;  %s1275_s16 = int_to_ptr.vmem [resolvable:$true] %s700_s16 }
  0x17   : > { %509 = vperm.xlu1 (!%p242_p10), %957, %v503_v6   ;;  %s970_s8 = scalar_lea.vmem (!%p242_p10), %s1275_s16, 128 }
  0x18   : > { %s279_s13 = scalar_select %p278_p11, %s1072_s24, 1  ;;  %v292_v11 = vld [vmem:[#allocation2] sm:$0xff] }
  0x19   : > { %p971_p12 = scmp.ne.s32.totalorder %s1275_s16, %s970_s8 }
  0x1a   : > { %s812_s14 = sshll.u32 %s279_s13, 3  ;;  %s810_s13 = sshll.u32 %s1264_s11, 4 }
  0x1b   : > { %s284_s17 = scalar_lea.vmem %s1362_s0, %s812_s14  ;;  %514 = vperm.xlu1 %957, %v504_v8   ;;  %s834_s14 = sshll.u32 %s1072_s24, 7 }
  0x1c   : > { %v1192_v2 = vld [vmem:[%s284_s17] sm:$0xff]  ;;  %s1273_s19 = scalar_lea.hbm %s1368_s6, %s834_s14  ;;  %s1277_s20 = scalar_lea.vmem [#allocation3], %s810_s13 }
  0x1d   : > { %294 = vrot.lane.b32.xlu0 %v1192_v2, %s1083_s18  ;;  %s683_s27 = sshll.u32 %s1277_s20, 4  ;;  %p972_p13 = pnand %p971_p12, %p1166_p4  ;;  %s1306_s27 = int_to_ptr.vmem [resolvable:$true] %s683_s27 }
  0x1e   : > { %s974_s14 = sshll.u32 %s1087_s12, 4  ;;  %s975_s14 = int_to_ptr.vmem [resolvable:$false] %s974_s14 }
  0x1f   : > { %560 = vperm.xlu1 %957, %v551_v10   ;;  %p973_p0 = pneg %p972_p13  ;;  %s976_s17 = scalar_lea.vmem %s975_s14, 256 }
  0x20   : > { %p977_p1 = scmp.lt.s32.totalorder %s1275_s16, %s975_s14  ;;  %p978_p2 = scmp.lt.s32.totalorder %s976_s17, %s970_s8 }
  0x21   : > { %519 = vperm.xlu0 %956, %v505_v4  }
  0x22   : > { %p979_p3 = por %p978_p2, %p977_p1 }
  0x24   : > { %p980_p5 = pnand %p979_p3, %p973_p0 }
  0x25   : > { %555 = vperm.xlu0 %956, %v550_v7  }
  0x29   : > { %565 = vperm.xlu0 %956, %v552_v9  }
  0x8f   : > { %v295_v12 = vpop.permute.xlu0 %294 }
  0x90   : > { %v298_v13 = vsel %vm289_vm0, %v292_v11, %v295_v12  ;;  %662 = vst.msk [vmem:[#allocation2] sm:$0xff] %vm289_vm0, %v295_v12 }
  0x91   : > { %853 = vmatprep.subr.mxu0 %v298_v13 }
  0x92   : > { %854 = vmatpush3.msra.mxu0 %v298_v13  ;;  %v525_v23 = vpop.permute.xlu1 %524 }
  0x93   : > { %856 = vmatmul.mubr.msk.f32.vlgmr.msra.gmra.mrb[0].mxu0 %vm308_vm1, %v814_v14  ;;  %861 = vmatprep.subr.mxu0 %v1192_v2 }
  0x94   : > { %862 = vmatpush3.msra.mxu0 %v1192_v2  ;;  %858 = vmatprep.mubr.msk.f32.mxu0 %vm308_vm1, %v815_v15 }
  0x96   : > { %v510_v30 = vpop.permute.xlu1 %509 }
  0x97   : > { %859 = vmatmul.mubr.msk.f32.gmra.mrb[2].mxu0 %vm308_vm1, %v816_v16 }
  0x98   : > { %863 = vmatprep.mubr.msk.f32.mxu0 %vm308_vm1, %v299_v17 }
  0x9a   : > { %v515_v33 = vpop.permute.xlu1 %514 }
  0x9b   : > { %864 = vmatmul.mubr.msk.f32.vlgmr.msra.gmra.mrb[0].mxu0 %vm308_vm1, %v300_v18 }
  0x9c   : > { %866 = vmatprep.mubr.msk.f32.mxu0 %vm308_vm1, %v301_v19 }
  0x9e   : > { %v561_v55 = vpop.permute.xlu1 %560 }
  0x9f   : > { %867 = vmatmul.mubr.msk.f32.gmra.mrb[2].mxu0 %vm308_vm1, %v302_v20 }
  0xa0   : > { %v520_v26 = vpop.permute.xlu0 %519 }
  0xa4   : > { %v556_v50 = vpop.permute.xlu0 %555 }
 0x16e   : > { %v865_v22 = vpop.f32.mrb[0].mxu0 }
 0x16f   : > { %v484_v24 = vpop.f32.mrb[1].mxu0  ;;  %v528_v34 = vadd.f32 %v865_v22, %v515_v33 }
 0x170   : > { %v527_v35 = vadd.f32 %v510_v30, %v484_v24 }
 0x172   : > { %v868_v25 = vpop.f32.mrb[2].mxu0 }
 0x173   : > { %v530_v27 = vadd.f32 %v868_v25, %v525_v23  ;;  %v494_v28 = vpop.f32.mrb[3].mxu0 }
 0x174   : > { %v529_v29 = vadd.f32 %v520_v26, %v494_v28 }
 0x175   : > { %v826_v31 = vmul.f32 -1.442695, %v530_v27 }
 0x176   : > { %v825_v32 = vmul.f32 -1.442695, %v529_v29 }
 0x177   : > { %958 = vpow2.f32 %v826_v31 }
 0x178   : > { %960 = vpow2.f32 %v825_v32 }
 0x179   : > { %962 = vtanh.f32 %v528_v34 }
 0x17a   : > { %964 = vtanh.f32 %v527_v35 }
 0x181   : > { %v959_v36 = vpop.eup %958 }
 0x182   : > { %v961_v37 = vpop.eup %960  ;;  %v540_v38 = vadd.f32 1.0, %v959_v36 }
 0x183   : > { %v539_v39 = vadd.f32 1.0, %v961_v37  ;;  %v963_v40 = vpop.eup %962 }
 0x184   : > { %966 = vrcp.f32 %v540_v38  ;;  %v965_v41 = vpop.eup %964 }
 0x185   : > { %968 = vrcp.f32 %v539_v39 }
 0x18e   : > { %v967_v42 = vpop.eup %966 }
 0x18f   : > { %v969_v43 = vpop.eup %968  ;;  %v546_v44 = vmul.f32 %v967_v42, %v963_v40 }
 0x190   : > { %v545_v45 = vmul.f32 %v969_v43, %v965_v41 }
 0x192   : > { %v883_v46 = vpack.c.bf16 %v546_v44, %v545_v45 }
 0x194   : > { %884 = vmatpush3.bf16.msra.mxu1 %v883_v46 }
 0x197   : > { %874 = vmatmul.mubr.msk.f32.vlgmr.msra.gmra.mrb[0].mxu1 %vm568_vm3, %v547_v47 }
 0x198   : > { %876 = vmatprep.mubr.msk.f32.mxu1 %vm1086_vm2, %v1082_v1 }
 0x19b   : > { %877 = vmatmul.mubr.msk.f32.gmra.mrb[2].mxu1 %vm568_vm3, %v548_v48 }
 0x19c   : > { %879 = vmatprep.mubr.msk.f32.mxu1 %vm1086_vm2, %v1082_v1 }
 0x19f   : > { %880 = vmatmul.mubr.msk.f32.gmra.mrb[4].mxu1 %vm568_vm3, %v549_v49 }
 0x26a   : > { %v644_v51 = vpop.f32.mrb[0].mxu1 }
 0x26b   : > { %v645_v52 = vadd.f32 %v644_v51, %v556_v50  ;;  %v875_v53 = vpop.f32.mrb[1].mxu1 }
 0x26d   : > { %v658_v54 = vadd.f32 %v645_v52, %v1192_v2 }
 0x26e   : > { %v649_v56 = vpop.f32.mrb[2].mxu1 }
 0x26f   : > { %v650_v57 = vadd.f32 %v649_v56, %v561_v55  ;;  %v878_v58 = vpop.f32.mrb[3].mxu1  ;;  %659 = vst [vmem:[%s277_s15] sm:$0xff] %v658_v54 }
 0x270   : > { %983 = shalt.err (!%p980_p5)
}
 0x271   : > { %s984_s13 = scalar_lea.hbm %s1273_s19, 128  ;;  %s988_s12 = scalar_lea.hbm %s1368_s6, 256 }
 0x272   : > { %p985_p6 = scmp.ne.s32.totalorder %s1273_s19, %s984_s13  ;;  %p989_p10 = scmp.lt.u32.totalorder %s1273_s19, %s1368_s6 }
 0x273   : > { %p990_p11 = scmp.lt.u32.totalorder %s988_s12, %s984_s13  ;;  %p992_p13 = scmp.lt.u32.totalorder %s984_s13, %s1273_s19 }
 0x274   : > { %p986_p7 = pnand %p985_p6, %p1166_p4 }
 0x275   : > { %p991_p12 = por %p990_p11, %p989_p10 }
 0x276   : > { %p987_p9 = pneg %p986_p7 }
 0x277   : > { %p993_p0 = por %p992_p13, %p991_p12 }
 0x279   : > { %p994_p1 = pnand %p993_p0, %p987_p9 }
 0x27b   : > { %997 = shalt.err (!%p994_p1)
}
 0x27c   : > { %890 = dma.vmem_to_hbm [thread:$0]  (%p1166_p4), %s1275_s16, 128, %s1273_s19, %s669_s30   ;;  %660 = vst [vmem:[%s1277_s20] sm:$0xff] %v650_v57  ;;  %v566_v59 = vpop.permute.xlu0 %565  ;;  %v654_v60 = vpop.f32.mrb[4].mxu1 }
 0x27d   : > { %s1371_s28 = sshll.u32 %s1072_s24, 8  ;;  %v655_v61 = vadd.f32 %v654_v60, %v566_v59  ;;  %v881_v62 = vpop.f32.mrb[5].mxu1  ;;  %s664_s15 = scalar_lea.sflag [#allocation4], %s1264_s11 }
 0x27e   : > { %s1313_s13 = scalar_lea.hbm %s1367_s5, %s1371_s28  ;;  %s998_s16 = scalar_lea.vmem %s1306_s27, 256 }
 0x27f   : > { %661 = vst [vmem:[%s1277_s20 + $0x8] sm:$0xff] %v655_v61  ;;  %p999_p2 = scmp.ne.s32.totalorder %s1306_s27, %s998_s16  ;;  %s1088_s19 = smov [#allocation3]  }
 0x280   : > { %s1002_s30 = sshll.u32 %s1088_s19, 4  ;;  %s1003_s30 = int_to_ptr.vmem [resolvable:$false] %s1002_s30 }
 0x281   : > { %p1000_p3 = pnand %p999_p2, %p1166_p4  ;;  %s1004_s18 = scalar_lea.vmem %s1003_s30, 512 }
 0x282   : > { %p1005_p6 = scmp.lt.s32.totalorder %s1306_s27, %s1003_s30  ;;  %p1006_p7 = scmp.lt.s32.totalorder %s1004_s18, %s998_s16 }
 0x283   : > { %p1001_p5 = pneg %p1000_p3 }
 0x284   : > { %p1007_p9 = por %p1006_p7, %p1005_p6 }
 0x286   : > { %p1008_p10 = pnand %p1007_p9, %p1001_p5 }
 0x288   : > { %1011 = shalt.err (!%p1008_p10)
}
 0x289   : > { %s1012_s24 = scalar_lea.hbm %s1313_s13, 256  ;;  %s1016_s14 = scalar_lea.hbm %s1367_s5, 512 }
 0x28a   : > { %p1013_p11 = scmp.ne.s32.totalorder %s1313_s13, %s1012_s24  ;;  %p1017_p0 = scmp.lt.u32.totalorder %s1313_s13, %s1367_s5 }
 0x28b   : > { %p1018_p1 = scmp.lt.u32.totalorder %s1016_s14, %s1012_s24  ;;  %p1020_p3 = scmp.lt.u32.totalorder %s1012_s24, %s1313_s13 }
 0x28c   : > { %p1014_p12 = pnand %p1013_p11, %p1166_p4 }
 0x28d   : > { %p1019_p2 = por %p1018_p1, %p1017_p0 }
 0x28e   : > { %p1015_p13 = pneg %p1014_p12 }
 0x28f   : > { %p1021_p5 = por %p1020_p3, %p1019_p2 }
 0x291   : > { %p1022_p6 = pnand %p1021_p5, %p1015_p13 }
 0x293   : > { %1025 = shalt.err (!%p1022_p6)
}
 0x294   : > { %s1089_s17 = smov 128   ;;  %s1090_s16 = smov 8  }
 0x295   : > { %889 = dma.vmem_to_hbm [thread:$0]  (%p1166_p4), %s1306_s27, 256, %s1313_s13, %s664_s15, %s1089_s17, %s1089_s17, %s1090_s16  }
 0x296 PF: > { %p900_p7 = scmp.ge.s32.totalorder %s1080_s26, 2  ;;  %s712_s19 = sand.u32 1, %s1060_s21  }
 0x297   : > { %s713_s30 = scalar_lea.sflag [#allocation4], %s712_s19 }
 0x298   : > { %p894_p9 = pnand %p900_p7, %p1173_p8 }
 0x29a   : > { %1051 = dma.done.wait (!%p894_p9), %s713_s30, 256  }
 0x29b   : > { %1053 = vsyncadd (!%p894_p9), %s713_s30, 4294967040  ;;  %s722_s18 = scalar_lea.sflag [#allocation6], %s712_s19 }
 0x29c   : > { %1055 = dma.done.wait (!%p894_p9), %s722_s18, 128  }
 0x29d   : > { %1057 = vsyncadd (!%p894_p9), %s722_s18, 4294967168  ;;  %s23_s26 = sadd.s32 1, %s1080_s26   ;;  %s1372_s21 = smov %s1064_s22 }
 0x29e   : > { %p20_p10 = scmp.ge.s32.totalorder %s23_s26, 4   ;;  %s1373_s22 = smov %s1068_s23 }
 0x29f   : > { %s1374_s23 = smov %s1179_s10  ;;  %s1375_s24 = smov %s1076_s25 }
 0x2a0   : > { %s1376_s25 = smov %s1378_s29  ;;  %22 = sbr.rel (!%p20_p10) target bundleno = 6 (0x6), region = 97 }
 0x2a7   :  { %727 = vsyncpa [#allocation4], 1 }
 0x2a8   :  { %729 = vsyncpa [#allocation4 + $0x1], 1 }
 0x2a9   :  { %730 = vsyncpa [#allocation6], 1 }
 0x2aa   :  { %732 = vsyncpa [#allocation6 + $0x1], 1 }

</bundles_post_ra>
